<compile_context>
chip_gen: v7x
topology: tpu7x:2x2x1
jax: 0.10.0
libtpu: 0.0.40
codegen_flags: <defaults>
</compile_context>

<pallas_src>
import functools

import jax
import jax.numpy as jnp
from jax import lax
from jax.experimental import pallas as pl
from jax.experimental.pallas import tpu as pltpu


def _round_up(n, m):
    return (n + m - 1) // m * m


def _make_ffn_kernel(d_model_actual):
    """Kernel closure; d_model_actual is the unpadded LayerNorm width."""
    inv_d = 1.0 / float(d_model_actual)

    def ffn_kernel(x_ref, w1_ref, b1_ref, w2_ref, b2_ref, g_ref, beta_ref, o_ref):
        # x tile: (tm, Dp), native dtype (bf16 stays bf16 on the MXU).
        x = x_ref[...]

        # fc1 + bias + relu  -- f32 accumulation on the MXU.
        h = jnp.dot(x, w1_ref[...], preferred_element_type=jnp.float32)
        h = h + b1_ref[...].astype(jnp.float32)
        h = jnp.maximum(h, 0.0)

        # fc2: cast activations back to the weight dtype for the fast MXU path.
        h = h.astype(w2_ref.dtype)
        y = jnp.dot(h, w2_ref[...], preferred_element_type=jnp.float32)

        # bias + (dropout p=0 is identity) + residual, all in f32.
        y = y + b2_ref[...].astype(jnp.float32) + x.astype(jnp.float32)

        # One-pass LayerNorm over the unpadded model dim (eps = 1e-5).
        # Padded columns of y are exactly zero, so sums over Dp == sums over D.
        s1 = jnp.sum(y, axis=-1, keepdims=True)
        s2 = jnp.sum(y * y, axis=-1, keepdims=True)
        mean = s1 * inv_d
        var = jnp.maximum(s2 * inv_d - mean * mean, 0.0)
        inv_std = lax.rsqrt(var + 1e-5)
        out = (y - mean) * inv_std * g_ref[...].astype(jnp.float32)
        out = out + beta_ref[...].astype(jnp.float32)

        o_ref[...] = out.astype(o_ref.dtype)

    return ffn_kernel


@functools.partial(jax.jit, static_argnames=("tm", "vmem_limit_bytes"))
def position_wise_feed_forward(x, w1, b1, w2, b2, gamma, beta, *,
                               tm=256, vmem_limit_bytes=None):
    """x: (batch, seq, d_model). Returns same shape/dtype.

    w1: (d_model, hidden)   b1: (hidden,)
    w2: (hidden, d_model)   b2: (d_model,)
    gamma, beta: (d_model,) LayerNorm affine params.
    """
    B, S, D = x.shape
    Din, H = w1.shape
    assert Din == D and w2.shape == (H, D)

    rows = B * S

    # Lane-dense padding of the model / hidden dims (multiples of 128).
    Dp = _round_up(D, 128)
    Hp = _round_up(H, 128)

    # Row tile: multiple of 8 sublanes, no larger than the (rounded) row count.
    tm_eff = _round_up(min(tm, _round_up(rows, 8)), 8)
    rows_p = _round_up(rows, tm_eff)

    x2d = jnp.pad(x.reshape(rows, D), ((0, rows_p - rows), (0, Dp - D)))
    w1p = jnp.pad(w1, ((0, Dp - D), (0, Hp - H)))
    w2p = jnp.pad(w2, ((0, Hp - H), (0, Dp - D)))
    b1p = jnp.pad(b1, (0, Hp - H)).reshape(1, Hp)
    b2p = jnp.pad(b2, (0, Dp - D)).reshape(1, Dp)
    gp = jnp.pad(gamma, (0, Dp - D)).reshape(1, Dp)
    betp = jnp.pad(beta, (0, Dp - D)).reshape(1, Dp)

    grid = (rows_p // tm_eff,)

    # VMEM budget: resident weights + double-buffered (tm, Dp) x/out tiles
    # + intermediate (tm, Hp) activations + headroom.
    weight_bytes = (w1p.size + w2p.size) * jnp.dtype(w1p.dtype).itemsize
    tile_bytes = 2 * 2 * tm_eff * Dp * 4 + tm_eff * Hp * 4
    if vmem_limit_bytes is None:
        vmem_limit_bytes = int(
            min(max(weight_bytes + tile_bytes + (8 << 20), 32 << 20), 112 << 20))

    cost = pl.CostEstimate(
        flops=4 * rows * D * H,                 # two matmuls, 2 flops per MAC
        transcendentals=0,
        bytes_accessed=int(2 * rows_p * Dp * jnp.dtype(x.dtype).itemsize
                           + weight_bytes))

    out2d = pl.pallas_call(
        _make_ffn_kernel(D),
        out_shape=jax.ShapeDtypeStruct((rows_p, Dp), x.dtype),
        grid_spec=pltpu.PrefetchScalarGridSpec(
            num_scalar_prefetch=0,
            grid=grid,
            in_specs=[
                pl.BlockSpec((tm_eff, Dp), lambda i: (i, 0)),   # x rows
                pl.BlockSpec((Dp, Hp), lambda i: (0, 0)),       # W1 (resident)
                pl.BlockSpec((1, Hp), lambda i: (0, 0)),        # b1
                pl.BlockSpec((Hp, Dp), lambda i: (0, 0)),       # W2 (resident)
                pl.BlockSpec((1, Dp), lambda i: (0, 0)),        # b2
                pl.BlockSpec((1, Dp), lambda i: (0, 0)),        # gamma
                pl.BlockSpec((1, Dp), lambda i: (0, 0)),        # beta
            ],
            out_specs=pl.BlockSpec((tm_eff, Dp), lambda i: (i, 0)),
        ),
        compiler_params=pltpu.CompilerParams(
            dimension_semantics=("parallel",),
            vmem_limit_bytes=vmem_limit_bytes),
        cost_estimate=cost,
    )(x2d, w1p, b1p, w2p, b2p, gp, betp)

    return out2d[:rows, :D].reshape(B, S, D)


def reference(x, w1, b1, w2, b2, gamma, beta):
    xf = x.astype(jnp.float32)
    h = jnp.maximum(xf @ w1.astype(jnp.float32) + b1.astype(jnp.float32), 0.0)
    y = h @ w2.astype(jnp.float32) + b2.astype(jnp.float32) + xf
    mean = jnp.mean(y, axis=-1, keepdims=True)
    var = jnp.mean((y - mean) ** 2, axis=-1, keepdims=True)
    return ((y - mean) / jnp.sqrt(var + 1e-5) * gamma.astype(jnp.float32)
            + beta.astype(jnp.float32))


def _make_params(key, D, H, dtype):
    kx, k1, kb1, k2, kb2, kg, kb = jax.random.split(key, 7)
    w1 = (jax.random.normal(k1, (D, H), jnp.float32) * 0.1).astype(dtype)
    b1 = (jax.random.normal(kb1, (H,), jnp.float32) * 0.1).astype(dtype)
    w2 = (jax.random.normal(k2, (H, D), jnp.float32) * 0.1).astype(dtype)
    b2 = (jax.random.normal(kb2, (D,), jnp.float32) * 0.1).astype(dtype)
    gamma = (1.0 + 0.1 * jax.random.normal(kg, (D,), jnp.float32)).astype(dtype)
    beta = (0.1 * jax.random.normal(kb, (D,), jnp.float32)).astype(dtype)
    return kx, w1, b1, w2, b2, gamma, beta


if __name__ == "__main__":
    key = jax.random.PRNGKey(0)

    # --- Test 1: small f32 shapes matching the module's toy config -----------
    B, S, D, H = 2, 8, 32, 64
    kx, w1, b1, w2, b2, gamma, beta = _make_params(key, D, H, jnp.float32)
    x = jax.random.normal(kx, (B, S, D), dtype=jnp.float32)

    out = position_wise_feed_forward(x, w1, b1, w2, b2, gamma, beta)
    out = jax.block_until_ready(out)
    ref = reference(x, w1, b1, w2, b2, gamma, beta)
    assert out.shape == (B, S, D)
    assert jnp.allclose(out, ref, atol=1e-4, rtol=1e-4), "f32 mismatch vs reference"

    # --- Test 2: ragged row count + multi-tile grid (exercises row padding) ---
    B2, S2, D2, H2 = 3, 100, 128, 256        # rows = 300, tm=128 -> grid of 3
    key2 = jax.random.PRNGKey(0)
    kx2, w1b, b1b, w2b, b2b, gb, bb = _make_params(key2, D2, H2, jnp.float32)
    x2 = jax.random.normal(kx2, (B2, S2, D2), dtype=jnp.float32)

    out2 = position_wise_feed_forward(x2, w1b, b1b, w2b, b2b, gb, bb, tm=128)
    out2 = jax.block_until_ready(out2)
    ref2 = reference(x2, w1b, b1b, w2b, b2b, gb, bb)
    assert out2.shape == (B2, S2, D2)
    assert jnp.allclose(out2, ref2, atol=1e-3, rtol=1e-3), "ragged f32 mismatch"

    # --- Test 3: bf16 operands (fast MXU path), loose tolerance ---------------
    kx3, w1c, b1c, w2c, b2c, gc, bc = _make_params(jax.random.PRNGKey(0), D2, H2,
                                                   jnp.bfloat16)
    x3 = jax.random.normal(kx3, (B2, S2, D2), jnp.float32).astype(jnp.bfloat16)

    out3 = position_wise_feed_forward(x3, w1c, b1c, w2c, b2c, gc, bc, tm=256)
    out3 = jax.block_until_ready(out3)
    ref3 = reference(x3, w1c, b1c, w2c, b2c, gc, bc)
    assert out3.shape == (B2, S2, D2)
    assert jnp.max(jnp.abs(out3.astype(jnp.float32) - ref3)) < 1e-1, "bf16 mismatch"

    print("KERNEL_OK")
</pallas_src>

<mosaic_0001>
module attributes {stable_mosaic.version = 11 : i64} {
  func.func @ffn_kernel(%arg0: i32, %arg1: memref<16x128xf32, #tpu.memory_space<vmem>>, %arg2: memref<128x128xf32, #tpu.memory_space<vmem>>, %arg3: memref<1x128xf32, #tpu.memory_space<vmem>>, %arg4: memref<128x128xf32, #tpu.memory_space<vmem>>, %arg5: memref<1x128xf32, #tpu.memory_space<vmem>>, %arg6: memref<1x128xf32, #tpu.memory_space<vmem>>, %arg7: memref<1x128xf32, #tpu.memory_space<vmem>>, %arg8: memref<16x128xf32, #tpu.memory_space<vmem>>) attributes {dimension_semantics = [#tpu.dimension_semantics<parallel>], iteration_bounds = array<i64: 1>, scalar_prefetch = 0 : i64, scratch_operands = 0 : i64, tpu.core_type = #tpu.core_type<tc>, window_params = [{transform_indices = @transform_0, window_bounds = array<i64: 16, 128>}, {pipeline_mode = #tpu.pipeline_mode<synchronous>, transform_indices = @transform_1, window_bounds = array<i64: 128, 128>}, {pipeline_mode = #tpu.pipeline_mode<synchronous>, transform_indices = @transform_2, window_bounds = array<i64: 1, 128>}, {pipeline_mode = #tpu.pipeline_mode<synchronous>, transform_indices = @transform_3, window_bounds = array<i64: 128, 128>}, {pipeline_mode = #tpu.pipeline_mode<synchronous>, transform_indices = @transform_4, window_bounds = array<i64: 1, 128>}, {pipeline_mode = #tpu.pipeline_mode<synchronous>, transform_indices = @transform_5, window_bounds = array<i64: 1, 128>}, {pipeline_mode = #tpu.pipeline_mode<synchronous>, transform_indices = @transform_6, window_bounds = array<i64: 1, 128>}, {transform_indices = @transform_7, window_bounds = array<i64: 16, 128>}]} {
    %c0 = arith.constant 0 : index
    %c0_0 = arith.constant 0 : index
    %0 = vector.load %arg1[%c0, %c0_0] : memref<16x128xf32, #tpu.memory_space<vmem>>, vector<16x128xf32>
    %c0_1 = arith.constant 0 : index
    %c0_2 = arith.constant 0 : index
    %1 = vector.load %arg2[%c0_1, %c0_2] : memref<128x128xf32, #tpu.memory_space<vmem>>, vector<128x128xf32>
    %cst = arith.constant dense<0.000000e+00> : vector<16x128xf32>
    %2 = tpu.matmul %0, %1, %cst {dimension_numbers = #tpu.dot_dimension_numbers<[1], [0], [0], [1], [0, 0, 1, 1], [], []>} : vector<16x128xf32>, vector<128x128xf32>, vector<16x128xf32> -> vector<16x128xf32>
    %c0_3 = arith.constant 0 : index
    %c0_4 = arith.constant 0 : index
    %3 = vector.load %arg3[%c0_3, %c0_4] : memref<1x128xf32, #tpu.memory_space<vmem>>, vector<1x128xf32>
    %4 = vector.broadcast %3 : vector<1x128xf32> to vector<16x128xf32>
    %5 = arith.addf %2, %4 : vector<16x128xf32>
    %cst_5 = arith.constant 0.000000e+00 : f32
    %6 = vector.broadcast %cst_5 : f32 to vector<16x128xf32>
    %7 = arith.maximumf %5, %6 : vector<16x128xf32>
    %c0_6 = arith.constant 0 : index
    %c0_7 = arith.constant 0 : index
    %8 = vector.load %arg4[%c0_6, %c0_7] : memref<128x128xf32, #tpu.memory_space<vmem>>, vector<128x128xf32>
    %cst_8 = arith.constant dense<0.000000e+00> : vector<16x128xf32>
    %9 = tpu.matmul %7, %8, %cst_8 {dimension_numbers = #tpu.dot_dimension_numbers<[1], [0], [0], [1], [0, 0, 1, 1], [], []>} : vector<16x128xf32>, vector<128x128xf32>, vector<16x128xf32> -> vector<16x128xf32>
    %c0_9 = arith.constant 0 : index
    %c0_10 = arith.constant 0 : index
    %10 = vector.load %arg5[%c0_9, %c0_10] : memref<1x128xf32, #tpu.memory_space<vmem>>, vector<1x128xf32>
    %11 = vector.broadcast %10 : vector<1x128xf32> to vector<16x128xf32>
    %12 = arith.addf %9, %11 : vector<16x128xf32>
    %13 = arith.addf %12, %0 : vector<16x128xf32>
    %cst_11 = arith.constant dense<0.000000e+00> : vector<16xf32>
    %14 = vector.multi_reduction <add>, %13, %cst_11 [1] : vector<16x128xf32> to vector<16xf32>
    %15 = vector.shape_cast %14 : vector<16xf32> to vector<16x1xf32>
    %16 = arith.mulf %13, %13 : vector<16x128xf32>
    %cst_12 = arith.constant dense<0.000000e+00> : vector<16xf32>
    %17 = vector.multi_reduction <add>, %16, %cst_12 [1] : vector<16x128xf32> to vector<16xf32>
    %18 = vector.shape_cast %17 : vector<16xf32> to vector<16x1xf32>
    %cst_13 = arith.constant 3.125000e-02 : f32
    %19 = vector.broadcast %cst_13 : f32 to vector<16x1xf32>
    %20 = arith.mulf %15, %19 : vector<16x1xf32>
    %cst_14 = arith.constant 3.125000e-02 : f32
    %21 = vector.broadcast %cst_14 : f32 to vector<16x1xf32>
    %22 = arith.mulf %18, %21 : vector<16x1xf32>
    %23 = arith.mulf %20, %20 : vector<16x1xf32>
    %24 = arith.subf %22, %23 : vector<16x1xf32>
    %cst_15 = arith.constant 0.000000e+00 : f32
    %25 = vector.broadcast %cst_15 : f32 to vector<16x1xf32>
    %26 = arith.maximumf %24, %25 : vector<16x1xf32>
    %cst_16 = arith.constant 9.99999974E-6 : f32
    %27 = vector.broadcast %cst_16 : f32 to vector<16x1xf32>
    %28 = arith.addf %26, %27 : vector<16x1xf32>
    %29 = math.rsqrt %28 : vector<16x1xf32>
    %30 = vector.broadcast %20 : vector<16x1xf32> to vector<16x128xf32>
    %31 = arith.subf %13, %30 : vector<16x128xf32>
    %32 = vector.broadcast %29 : vector<16x1xf32> to vector<16x128xf32>
    %33 = arith.mulf %31, %32 : vector<16x128xf32>
    %c0_17 = arith.constant 0 : index
    %c0_18 = arith.constant 0 : index
    %34 = vector.load %arg6[%c0_17, %c0_18] : memref<1x128xf32, #tpu.memory_space<vmem>>, vector<1x128xf32>
    %35 = vector.broadcast %34 : vector<1x128xf32> to vector<16x128xf32>
    %36 = arith.mulf %33, %35 : vector<16x128xf32>
    %c0_19 = arith.constant 0 : index
    %c0_20 = arith.constant 0 : index
    %37 = vector.load %arg7[%c0_19, %c0_20] : memref<1x128xf32, #tpu.memory_space<vmem>>, vector<1x128xf32>
    %38 = vector.broadcast %37 : vector<1x128xf32> to vector<16x128xf32>
    %39 = arith.addf %36, %38 : vector<16x128xf32>
    %c0_21 = arith.constant 0 : index
    %c0_22 = arith.constant 0 : index
    %40 = vector.load %arg8[%c0_21, %c0_22] : memref<16x128xf32, #tpu.memory_space<vmem>>, vector<16x128xf32>
    tpu.vector_store %arg8[%c0_21, %c0_22], %39 {strides = array<i32>} : memref<16x128xf32, #tpu.memory_space<vmem>>, vector<16x128xf32>,
    return
  }
  func.func @transform_0(%arg0: i32) -> (i32, i32) {
    %c0_i32 = arith.constant 0 : i32
    %c0_i32_0 = arith.constant 0 : i32
    return %arg0, %c0_i32 : i32, i32
  }
  func.func @transform_1(%arg0: i32) -> (i32, i32) {
    %c0_i32 = arith.constant 0 : i32
    %c0_i32_0 = arith.constant 0 : i32
    %c0_i32_1 = arith.constant 0 : i32
    return %c0_i32, %c0_i32_0 : i32, i32
  }
  func.func @transform_2(%arg0: i32) -> (i32, i32) {
    %c0_i32 = arith.constant 0 : i32
    %c0_i32_0 = arith.constant 0 : i32
    %c0_i32_1 = arith.constant 0 : i32
    return %c0_i32, %c0_i32_0 : i32, i32
  }
  func.func @transform_3(%arg0: i32) -> (i32, i32) {
    %c0_i32 = arith.constant 0 : i32
    %c0_i32_0 = arith.constant 0 : i32
    %c0_i32_1 = arith.constant 0 : i32
    return %c0_i32, %c0_i32_0 : i32, i32
  }
  func.func @transform_4(%arg0: i32) -> (i32, i32) {
    %c0_i32 = arith.constant 0 : i32
    %c0_i32_0 = arith.constant 0 : i32
    %c0_i32_1 = arith.constant 0 : i32
    return %c0_i32, %c0_i32_0 : i32, i32
  }
  func.func @transform_5(%arg0: i32) -> (i32, i32) {
    %c0_i32 = arith.constant 0 : i32
    %c0_i32_0 = arith.constant 0 : i32
    %c0_i32_1 = arith.constant 0 : i32
    return %c0_i32, %c0_i32_0 : i32, i32
  }
  func.func @transform_6(%arg0: i32) -> (i32, i32) {
    %c0_i32 = arith.constant 0 : i32
    %c0_i32_0 = arith.constant 0 : i32
    %c0_i32_1 = arith.constant 0 : i32
    return %c0_i32, %c0_i32_0 : i32, i32
  }
  func.func @transform_7(%arg0: i32) -> (i32, i32) {
    %c0_i32 = arith.constant 0 : i32
    %c0_i32_0 = arith.constant 0 : i32
    return %arg0, %c0_i32 : i32, i32
  }
}

</mosaic_0001>

<bundles_post_ra>
// kernel: position_wise_feed_forward.1
= control target key start
LH: loop header
LB: loop body
LE: loop exit
PB: predicated region body
PF: predicated region fallthrough
CT: control target
= control target key end

     0   :  { %s622_s1 = inlined_call_operand.vmem [shape: f32[128,128], index: 1, kind: input, shape index: {}]   ;;  %s623_s0 = inlined_call_operand.vmem [shape: f32[16,128], index: 0, kind: input, shape index: {}]   ;;  %s624_s3 = inlined_call_operand.vmem [shape: f32[128,128], index: 3, kind: input, shape index: {}]   ;;  %s625_s2 = inlined_call_operand.vmem [shape: f32[1,128], index: 2, kind: input, shape index: {}]   ;;  %s626_s4 = inlined_call_operand.vmem [shape: f32[1,128], index: 4, kind: input, shape index: {}]   ;;  %s627_s5 = inlined_call_operand.vmem [shape: f32[1,128], index: 5, kind: input, shape index: {}]   ;;  %s628_s6 = inlined_call_operand.vmem [shape: f32[1,128], index: 6, kind: input, shape index: {}]   ;;  %s629_s7 = inlined_call_operand.vmem [shape: f32[16,128], index: 7, kind: output, shape index: {}]  }
   0x1   :  { %v28_v0 = vld [vmem:[%s622_s1] sm:$0xff]  ;;  %v29_v1 = vld [vmem:[%s622_s1 + $0x8] sm:$0xff]  ;;  %v30_v2 = vld [vmem:[%s622_s1 + $0x10] sm:$0xff] }
   0x2   :  { %v390_v3 = vpack.c.bf16 %v29_v1, %v28_v0  ;;  %v31_v4 = vld [vmem:[%s622_s1 + $0x18] sm:$0xff]  ;;  %v32_v6 = vld [vmem:[%s622_s1 + $0x20] sm:$0xff]  ;;  %v33_v7 = vld [vmem:[%s622_s1 + $0x28] sm:$0xff] }
   0x3   :  { %v394_v5 = vpack.c.bf16 %v31_v4, %v30_v2  ;;  %v398_v8 = vpack.c.bf16 %v33_v7, %v32_v6  ;;  %v34_v9 = vld [vmem:[%s622_s1 + $0x30] sm:$0xff]  ;;  %v35_v10 = vld [vmem:[%s622_s1 + $0x38] sm:$0xff]  ;;  %v525_v11 = vld [vmem:[%s623_s0] sm:$0xff] }
   0x4   :  { %391 = vmatprep.subr.bf16.mxu0 %v390_v3  ;;  %352 = vmatprep.mubr.f32.mxu0 %v525_v11  ;;  %v128_v12 = vld [vmem:[%s624_s3] sm:$0xff]  ;;  %v129_v13 = vld [vmem:[%s624_s3 + $0x8] sm:$0xff]  ;;  %v130_v14 = vld [vmem:[%s624_s3 + $0x10] sm:$0xff]  ;;  %v402_v20 = vpack.c.bf16 %v35_v10, %v34_v9 }
   0x5   :  { %393 = vmatpush3.bf16.msra.mxu0 %v390_v3  ;;  %v422_v15 = vpack.c.bf16 %v129_v13, %v128_v12  ;;  %v131_v16 = vld [vmem:[%s624_s3 + $0x18] sm:$0xff]  ;;  %v132_v18 = vld [vmem:[%s624_s3 + $0x20] sm:$0xff]  ;;  %v133_v19 = vld [vmem:[%s624_s3 + $0x28] sm:$0xff] }
   0x6   :  { %395 = vmatprep.subr.bf16.mxu0 %v394_v5  ;;  %v426_v17 = vpack.c.bf16 %v131_v16, %v130_v14  ;;  %v36_v21 = vld [vmem:[%s622_s1 + $0x40] sm:$0xff]  ;;  %v37_v22 = vld [vmem:[%s622_s1 + $0x48] sm:$0xff]  ;;  %v430_v23 = vpack.c.bf16 %v133_v19, %v132_v18  ;;  %v134_v24 = vld [vmem:[%s624_s3 + $0x30] sm:$0xff] }
   0x7   :  { %423 = vmatprep.subr.bf16.mxu1 %v422_v15  ;;  %v135_v25 = vld [vmem:[%s624_s3 + $0x38] sm:$0xff]  ;;  %v406_v26 = vpack.c.bf16 %v37_v22, %v36_v21  ;;  %v38_v27 = vld [vmem:[%s622_s1 + $0x50] sm:$0xff]  ;;  %v136_v30 = vld [vmem:[%s624_s3 + $0x40] sm:$0xff] }
   0x8   :  { %425 = vmatpush3.bf16.msra.mxu1 %v422_v15  ;;  %v39_v28 = vld [vmem:[%s622_s1 + $0x58] sm:$0xff]  ;;  %v434_v29 = vpack.c.bf16 %v135_v25, %v134_v24  ;;  %v137_v31 = vld [vmem:[%s624_s3 + $0x48] sm:$0xff]  ;;  %v40_v33 = vld [vmem:[%s622_s1 + $0x60] sm:$0xff] }
   0x9   :  { %397 = vmatpush3.bf16.msra.mxu0 %v394_v5  ;;  %427 = vmatprep.subr.bf16.mxu1 %v426_v17  ;;  %v410_v32 = vpack.c.bf16 %v39_v28, %v38_v27  ;;  %v41_v34 = vld [vmem:[%s622_s1 + $0x68] sm:$0xff]  ;;  %v438_v35 = vpack.c.bf16 %v137_v31, %v136_v30  ;;  %v138_v36 = vld [vmem:[%s624_s3 + $0x50] sm:$0xff]  ;;  %v139_v37 = vld [vmem:[%s624_s3 + $0x58] sm:$0xff] }
   0xa   :  { %399 = vmatprep.subr.bf16.mxu0 %v398_v8  ;;  %v414_v38 = vpack.c.bf16 %v41_v34, %v40_v33  ;;  %v42_v39 = vld [vmem:[%s622_s1 + $0x70] sm:$0xff]  ;;  %v43_v40 = vld [vmem:[%s622_s1 + $0x78] sm:$0xff]  ;;  %v442_v41 = vpack.c.bf16 %v139_v37, %v138_v36  ;;  %v140_v42 = vld [vmem:[%s624_s3 + $0x60] sm:$0xff] }
   0xb   :  { %v141_v43 = vld [vmem:[%s624_s3 + $0x68] sm:$0xff]  ;;  %v418_v44 = vpack.c.bf16 %v43_v40, %v42_v39  ;;  %v142_v47 = vld [vmem:[%s624_s3 + $0x70] sm:$0xff]  ;;  %v143_v48 = vld [vmem:[%s624_s3 + $0x78] sm:$0xff] }
   0xc   :  { %429 = vmatpush3.bf16.msra.mxu1 %v426_v17  ;;  %v446_v45 = vpack.c.bf16 %v141_v43, %v140_v42  ;;  %v27_v46 = vld [vmem:[%s623_s0 + $0x8] sm:$0xff]  ;;  %v450_v49 = vpack.c.bf16 %v143_v48, %v142_v47  ;;  %v280_v50 = vld [vmem:[%s625_s2] ss:$0 sm:$0xff] }
   0xd   :  { %401 = vmatpush3.bf16.msra.mxu0 %v398_v8  ;;  %431 = vmatprep.subr.bf16.mxu1 %v430_v23  ;;  %v281_v57 = vld [vmem:[%s626_s4] ss:$0 sm:$0xff] }
   0xe   :  { %403 = vmatprep.subr.bf16.mxu0 %v402_v20  ;;  %v283_v22 = vld [vmem:[%s628_s6] ss:$0 sm:$0xff] }
  0x10   :  { %433 = vmatpush3.bf16.msra.mxu1 %v430_v23 }
  0x11   :  { %405 = vmatpush3.bf16.msra.mxu0 %v402_v20  ;;  %435 = vmatprep.subr.bf16.mxu1 %v434_v29  ;;  %v282_v20 = vld [vmem:[%s627_s5] ss:$0 sm:$0xff] }
  0x12   :  { %407 = vmatprep.subr.bf16.mxu0 %v406_v26 }
  0x14   :  { %437 = vmatpush3.bf16.msra.mxu1 %v434_v29 }
  0x15   :  { %409 = vmatpush3.bf16.msra.mxu0 %v406_v26  ;;  %439 = vmatprep.subr.bf16.mxu1 %v438_v35 }
  0x16   :  { %411 = vmatprep.subr.bf16.mxu0 %v410_v32 }
  0x18   :  { %441 = vmatpush3.bf16.msra.mxu1 %v438_v35 }
  0x19   :  { %413 = vmatpush3.bf16.msra.mxu0 %v410_v32  ;;  %443 = vmatprep.subr.bf16.mxu1 %v442_v41 }
  0x1a   :  { %415 = vmatprep.subr.bf16.mxu0 %v414_v38 }
  0x1c   :  { %445 = vmatpush3.bf16.msra.mxu1 %v442_v41 }
  0x1d   :  { %417 = vmatpush3.bf16.msra.mxu0 %v414_v38  ;;  %447 = vmatprep.subr.bf16.mxu1 %v446_v45 }
  0x1e   :  { %419 = vmatprep.subr.bf16.mxu0 %v418_v44 }
  0x20   :  { %449 = vmatpush3.bf16.msra.mxu1 %v446_v45 }
  0x21   :  { %421 = vmatpush3.bf16.msra.mxu0 %v418_v44  ;;  %451 = vmatprep.subr.bf16.mxu1 %v450_v49 }
  0x24   :  { %353 = vmatmul.mubr.f32.vlgmr.msra.gmra.mrb[0].mxu0 %v27_v46  ;;  %453 = vmatpush3.bf16.msra.mxu1 %v450_v49 }
  0xf7   :  { %v354_v51 = vpop.f32.mrb[0].mxu0 }
  0xf8   :  { %v123_v52 = vadd.f32 %v354_v51, %v280_v50  ;;  %v117_v53 = vpop.f32.mrb[1].mxu0 }
  0xf9   :  { %v118_v54 = vadd.f32 %v280_v50, %v117_v53 }
  0xfa   :  { %v127_v56 = vmax.f32 %v123_v52, 0.0 }
  0xfb   :  { %v126_v55 = vmax.f32 %v118_v54, 0.0 }
  0xfd   :  { %387 = vmatprep.mubr.f32.mxu1 %v126_v55 }
  0xfe   :  { %388 = vmatmul.mubr.f32.vlgmr.msra.gmra.mrb[0].mxu1 %v127_v56 }
 0x1d1   :  { %v389_v58 = vpop.f32.mrb[0].mxu1 }
 0x1d2   :  { %v217_v59 = vpop.f32.mrb[1].mxu1  ;;  %v223_v60 = vadd.f32 %v389_v58, %v281_v57 }
 0x1d3   :  { %v218_v61 = vadd.f32 %v281_v57, %v217_v59 }
 0x1d4   :  { %v227_v63 = vadd.f32 %v223_v60, %v27_v46 }
 0x1d5   :  { %v226_v62 = vadd.f32 %v218_v61, %v525_v11 }
 0x1d6   :  { %v233_v1 = vmul.f32 %v227_v63, %v227_v63 }
 0x1d7   :  { %228 = vadd.xlane.f32.xlu0 %v226_v62  ;;  %v232_v0 = vmul.f32 %v226_v62, %v226_v62 }
 0x1d9   :  { %234 = vadd.xlane.f32.xlu1 %v232_v0 }
 0x1db   :  { %230 = vadd.xlane.f32.xlu0 %v227_v63 }
 0x1dd   :  { %236 = vadd.xlane.f32.xlu1 %v233_v1 }
 0x264   :  { %v229_v2 = vpop.xlane.xlu0 %228 }
 0x265   :  { %v238_v3 = vmul.f32 0.03125, %v229_v2 }
 0x266   :  { %v235_v4 = vpop.xlane.xlu1 %234 }
 0x267   :  { %v242_v5 = vmul.f32 %v238_v3, %v238_v3  ;;  %v240_v6 = vmul.f32 0.03125, %v235_v4  ;;  %v252_v18 = vsub.f32 %v226_v62, %v238_v3 }
 0x268   :  { %v231_v7 = vpop.xlane.xlu0 %230 }
 0x269   :  { %v244_v8 = vsub.f32 %v240_v6, %v242_v5  ;;  %v239_v9 = vmul.f32 0.03125, %v231_v7 }
 0x26a   :  { %v237_v10 = vpop.xlane.xlu1 %236 }
 0x26b   :  { %v246_v12 = vmax.f32 %v244_v8, 0.0  ;;  %v243_v13 = vmul.f32 %v239_v9, %v239_v9  ;;  %v241_v14 = vmul.f32 0.03125, %v237_v10  ;;  %v253_v24 = vsub.f32 %v227_v63, %v239_v9 }
 0x26d   :  { %v248_v11 = vadd.f32 1e-05, %v246_v12  ;;  %v245_v15 = vsub.f32 %v241_v14, %v243_v13 }
 0x26f   :  { %454 = vrsqrt.f32 %v248_v11  ;;  %v247_v16 = vmax.f32 %v245_v15, 0.0 }
 0x271   :  { %v249_v17 = vadd.f32 1e-05, %v247_v16 }
 0x273   :  { %456 = vrsqrt.f32 %v249_v17 }
 0x279   :  { %v455_v19 = vpop.eup %454 }
 0x27a   :  { %v254_v21 = vmul.f32 %v455_v19, %v252_v18 }
 0x27c   :  { %v263_v23 = vmul.f32 %v282_v20, %v254_v21 }
 0x27d   :  { %v457_v25 = vpop.eup %456 }
 0x27e   :  { %v272_v26 = vadd.f32 %v283_v22, %v263_v23  ;;  %v255_v27 = vmul.f32 %v457_v25, %v253_v24 }
 0x280   :  { %274 = vst [vmem:[%s629_s7] sm:$0xff] %v272_v26  ;;  %v264_v28 = vmul.f32 %v282_v20, %v255_v27 }
 0x282   :  { %v273_v29 = vadd.f32 %v283_v22, %v264_v28 }
 0x284   :  { %275 = vst [vmem:[%s629_s7 + $0x8] sm:$0xff] %v273_v29 }

</bundles_post_ra>
